<compile_context>
chip_gen: v7x
topology: tpu7x:2x2x1
jax: 0.10.0
libtpu: 0.0.40
codegen_flags: <defaults>
</compile_context>

<pallas_src>
import functools

import jax
import jax.numpy as jnp
from jax.experimental import pallas as pl
from jax.experimental.pallas import tpu as pltpu


def _round_up(n: int, m: int) -> int:
    return ((n + m - 1) // m) * m


def _fcblock_kernel(x_ref, w1_ref, b1_ref, w2_ref, b2_ref, alpha_ref, o_ref,
                    *, residual: bool, compute_dtype):
    x = x_ref[...]                                   # (tb, in_p) float32
    alpha = alpha_ref[0, 0]                          # shared PReLU slope (SMEM scalar)

    def prelu(t):
        return jnp.maximum(t, 0.0) + alpha * jnp.minimum(t, 0.0)

    # fc1: x @ W1 + b1   -> (tb, hid_p); matmul inputs in compute_dtype, f32 accumulate.
    h = jnp.dot(x.astype(compute_dtype), w1_ref[...],
                preferred_element_type=jnp.float32) + b1_ref[...]
    h = prelu(h)

    # fc1_1: h @ W2 + b2 -> (tb, out_p)
    y = jnp.dot(h.astype(compute_dtype), w2_ref[...],
                preferred_element_type=jnp.float32) + b2_ref[...]

    if residual:                                     # out_depth == in_depth (f32 add)
        y = y + x

    o_ref[...] = prelu(y).astype(o_ref.dtype)


def fcblock_forward(x, params, *, tile_b=512, compute_dtype=jnp.float32):
    """x: (B, in_depth) float32. params: dict of w1, b1, w2, b2, alpha (unpadded)."""
    w1, b1, w2, b2, alpha = (params["w1"], params["b1"], params["w2"],
                             params["b2"], params["alpha"])
    B, in_depth = x.shape
    hidden_depth = w1.shape[1]
    out_depth = w2.shape[1]
    residual = (out_depth == in_depth)

    # ---- lane-dense feature padding (multiples of 128) -------------------------------
    in_p = _round_up(in_depth, 128)
    hid_p = _round_up(hidden_depth, 128)
    out_p = _round_up(out_depth, 128)

    # ---- batch tiling: multiple of 8 sublanes, pad B to a multiple of the tile -------
    tb = _round_up(min(tile_b, _round_up(B, 8)), 8)
    B_p = _round_up(B, tb)

    cdt = jnp.dtype(compute_dtype)
    x_p = jnp.zeros((B_p, in_p), jnp.float32).at[:B, :in_depth].set(
        x.astype(jnp.float32))
    w1_p = jnp.zeros((in_p, hid_p), cdt).at[:in_depth, :hidden_depth].set(
        w1.astype(cdt))
    b1_p = jnp.zeros((1, hid_p), jnp.float32).at[:, :hidden_depth].set(
        b1.astype(jnp.float32))
    w2_p = jnp.zeros((hid_p, out_p), cdt).at[:hidden_depth, :out_depth].set(
        w2.astype(cdt))
    b2_p = jnp.zeros((1, out_p), jnp.float32).at[:, :out_depth].set(
        b2.astype(jnp.float32))
    alpha_s = alpha.reshape(1, 1).astype(jnp.float32)

    # ---- VMEM budget (weights double-buffered by the default pipeline, io tiles x2,
    #      plus per-step intermediates), clamped to 64 MiB (safe on v7x) --------------
    wbytes = 2 * ((in_p * hid_p + hid_p * out_p) * cdt.itemsize
                  + (hid_p + out_p) * 4)
    iobytes = 2 * tb * (in_p + out_p) * 4
    tmpbytes = tb * (hid_p + out_p) * 4
    needed = wbytes + iobytes + tmpbytes
    vmem_limit = int(min(max(int(needed * 1.25), 32 * 1024 * 1024),
                         64 * 1024 * 1024))

    flops = 2 * B_p * (in_p * hid_p + hid_p * out_p)
    bytes_accessed = (x_p.size * 4 + w1_p.size * cdt.itemsize
                      + w2_p.size * cdt.itemsize + (hid_p + out_p) * 4
                      + B_p * out_p * 4)

    kernel = functools.partial(_fcblock_kernel, residual=residual,
                               compute_dtype=cdt)

    grid = (B_p // tb,)
    out_full = pl.pallas_call(
        kernel,
        out_shape=jax.ShapeDtypeStruct((B_p, out_p), jnp.float32),
        grid=grid,
        in_specs=[
            pl.BlockSpec((tb, in_p), lambda i: (i, 0)),            # x tile
            pl.BlockSpec((in_p, hid_p), lambda i: (0, 0)),         # W1 (resident)
            pl.BlockSpec((1, hid_p), lambda i: (0, 0)),            # b1
            pl.BlockSpec((hid_p, out_p), lambda i: (0, 0)),        # W2 (resident)
            pl.BlockSpec((1, out_p), lambda i: (0, 0)),            # b2
            pl.BlockSpec(memory_space=pltpu.MemorySpace.SMEM),     # alpha (1,1)
        ],
        out_specs=pl.BlockSpec((tb, out_p), lambda i: (i, 0)),
        compiler_params=pltpu.CompilerParams(
            dimension_semantics=("parallel",),
            vmem_limit_bytes=vmem_limit),
        cost_estimate=pl.CostEstimate(flops=flops, transcendentals=0,
                                      bytes_accessed=bytes_accessed),
    )(x_p, w1_p, b1_p, w2_p, b2_p, alpha_s)

    return out_full[:B, :out_depth]


def init_fcblock_params(key, in_depth, hidden_depth, out_depth):
    """Deterministic init mimicking nn.Linear (uniform +/- 1/sqrt(fan_in)) and PReLU(0.25)."""
    k1, k2, k3, k4 = jax.random.split(key, 4)
    bound1 = 1.0 / jnp.sqrt(in_depth)
    bound2 = 1.0 / jnp.sqrt(hidden_depth)
    # weights stored already transposed: (in_features, out_features)
    w1 = jax.random.uniform(k1, (in_depth, hidden_depth), jnp.float32, -bound1, bound1)
    b1 = jax.random.uniform(k2, (1, hidden_depth), jnp.float32, -bound1, bound1)
    w2 = jax.random.uniform(k3, (hidden_depth, out_depth), jnp.float32, -bound2, bound2)
    b2 = jax.random.uniform(k4, (1, out_depth), jnp.float32, -bound2, bound2)
    alpha = jnp.full((1, 1), 0.25, jnp.float32)      # PReLU default init
    return dict(w1=w1, b1=b1, w2=w2, b2=b2, alpha=alpha)


def fcblock_reference(x, params):
    """Pure-JAX reference of the PyTorch forward."""
    w1, b1, w2, b2, alpha = (params["w1"], params["b1"], params["w2"],
                             params["b2"], params["alpha"][0, 0])
    prelu = lambda t: jnp.where(t >= 0, t, alpha * t)
    h = prelu(x @ w1 + b1)
    y = h @ w2 + b2
    if w2.shape[1] == x.shape[1]:
        y = y + x
    return prelu(y)


if __name__ == "__main__":
    key = jax.random.PRNGKey(0)
    kp, kx, kp2, kx2 = jax.random.split(key, 4)

    # Residual config (out_depth == in_depth).
    in_d, hid_d, out_d, batch = 32, 64, 32, 16
    params = init_fcblock_params(kp, in_d, hid_d, out_d)
    x = jax.random.normal(kx, (batch, in_d), jnp.float32)

    out_f32 = jax.block_until_ready(fcblock_forward(x, params))
    ref = fcblock_reference(x, params)
    assert out_f32.shape == (batch, out_d)
    assert jnp.allclose(out_f32, ref, atol=1e-5, rtol=1e-5), "f32 mismatch vs reference"

    # bf16 matmul-input path (v6e/v7x fast path); f32 bias/PReLU/residual -> loose tol.
    out_bf16 = jax.block_until_ready(
        fcblock_forward(x, params, compute_dtype=jnp.bfloat16))
    assert jnp.allclose(out_bf16, ref, atol=5e-2, rtol=5e-2), "bf16 mismatch vs reference"

    # Non-residual config (out != in), batch not a multiple of 8 (exercises padding).
    in_d2, hid_d2, out_d2, batch2 = 32, 64, 48, 10
    params2 = init_fcblock_params(kp2, in_d2, hid_d2, out_d2)
    x2 = jax.random.normal(kx2, (batch2, in_d2), jnp.float32)
    out2 = jax.block_until_ready(fcblock_forward(x2, params2))
    ref2 = fcblock_reference(x2, params2)
    assert out2.shape == (batch2, out_d2)
    assert jnp.allclose(out2, ref2, atol=1e-5, rtol=1e-5), "non-residual mismatch"

    print("KERNEL_OK")
</pallas_src>

<mosaic_0001>
module attributes {stable_mosaic.version = 11 : i64} {
  func.func @_fcblock_kernel(%arg0: i32, %arg1: memref<16x128xf32, #tpu.memory_space<vmem>>, %arg2: memref<128x128xf32, #tpu.memory_space<vmem>>, %arg3: memref<1x128xf32, #tpu.memory_space<vmem>>, %arg4: memref<128x128xf32, #tpu.memory_space<vmem>>, %arg5: memref<1x128xf32, #tpu.memory_space<vmem>>, %arg6: memref<1x1xf32, #tpu.memory_space<smem>>, %arg7: memref<16x128xf32, #tpu.memory_space<vmem>>) attributes {dimension_semantics = [#tpu.dimension_semantics<parallel>], iteration_bounds = array<i64: 1>, scalar_prefetch = 0 : i64, scratch_operands = 0 : i64, tpu.core_type = #tpu.core_type<tc>, window_params = [{transform_indices = @transform_0, window_bounds = array<i64: 16, 128>}, {pipeline_mode = #tpu.pipeline_mode<synchronous>, transform_indices = @transform_1, window_bounds = array<i64: 128, 128>}, {pipeline_mode = #tpu.pipeline_mode<synchronous>, transform_indices = @transform_2, window_bounds = array<i64: 1, 128>}, {pipeline_mode = #tpu.pipeline_mode<synchronous>, transform_indices = @transform_3, window_bounds = array<i64: 128, 128>}, {pipeline_mode = #tpu.pipeline_mode<synchronous>, transform_indices = @transform_4, window_bounds = array<i64: 1, 128>}, {transform_indices = @transform_5, window_bounds = array<i64: 1, 1>}, {transform_indices = @transform_6, window_bounds = array<i64: 16, 128>}]} {
    %c0 = arith.constant 0 : index
    %c0_0 = arith.constant 0 : index
    %0 = vector.load %arg1[%c0, %c0_0] : memref<16x128xf32, #tpu.memory_space<vmem>>, vector<16x128xf32>
    %c0_1 = arith.constant 0 : index
    %c0_2 = arith.constant 0 : index
    %1 = memref.load %arg6[%c0_1, %c0_2] : memref<1x1xf32, #tpu.memory_space<smem>>
    %c0_3 = arith.constant 0 : index
    %c0_4 = arith.constant 0 : index
    %2 = vector.load %arg2[%c0_3, %c0_4] : memref<128x128xf32, #tpu.memory_space<vmem>>, vector<128x128xf32>
    %cst = arith.constant dense<0.000000e+00> : vector<16x128xf32>
    %3 = tpu.matmul %0, %2, %cst {dimension_numbers = #tpu.dot_dimension_numbers<[1], [0], [0], [1], [0, 0, 1, 1], [], []>} : vector<16x128xf32>, vector<128x128xf32>, vector<16x128xf32> -> vector<16x128xf32>
    %c0_5 = arith.constant 0 : index
    %c0_6 = arith.constant 0 : index
    %4 = vector.load %arg3[%c0_5, %c0_6] : memref<1x128xf32, #tpu.memory_space<vmem>>, vector<1x128xf32>
    %5 = vector.broadcast %4 : vector<1x128xf32> to vector<16x128xf32>
    %6 = arith.addf %3, %5 : vector<16x128xf32>
    %cst_7 = arith.constant 0.000000e+00 : f32
    %7 = vector.broadcast %cst_7 : f32 to vector<16x128xf32>
    %8 = arith.maximumf %6, %7 : vector<16x128xf32>
    %cst_8 = arith.constant 0.000000e+00 : f32
    %9 = vector.broadcast %cst_8 : f32 to vector<16x128xf32>
    %10 = arith.minimumf %6, %9 : vector<16x128xf32>
    %11 = vector.broadcast %1 : f32 to vector<16x128xf32>
    %12 = arith.mulf %11, %10 : vector<16x128xf32>
    %13 = arith.addf %8, %12 : vector<16x128xf32>
    %c0_9 = arith.constant 0 : index
    %c0_10 = arith.constant 0 : index
    %14 = vector.load %arg4[%c0_9, %c0_10] : memref<128x128xf32, #tpu.memory_space<vmem>>, vector<128x128xf32>
    %cst_11 = arith.constant dense<0.000000e+00> : vector<16x128xf32>
    %15 = tpu.matmul %13, %14, %cst_11 {dimension_numbers = #tpu.dot_dimension_numbers<[1], [0], [0], [1], [0, 0, 1, 1], [], []>} : vector<16x128xf32>, vector<128x128xf32>, vector<16x128xf32> -> vector<16x128xf32>
    %c0_12 = arith.constant 0 : index
    %c0_13 = arith.constant 0 : index
    %16 = vector.load %arg5[%c0_12, %c0_13] : memref<1x128xf32, #tpu.memory_space<vmem>>, vector<1x128xf32>
    %17 = vector.broadcast %16 : vector<1x128xf32> to vector<16x128xf32>
    %18 = arith.addf %15, %17 : vector<16x128xf32>
    %19 = arith.addf %18, %0 : vector<16x128xf32>
    %cst_14 = arith.constant 0.000000e+00 : f32
    %20 = vector.broadcast %cst_14 : f32 to vector<16x128xf32>
    %21 = arith.maximumf %19, %20 : vector<16x128xf32>
    %cst_15 = arith.constant 0.000000e+00 : f32
    %22 = vector.broadcast %cst_15 : f32 to vector<16x128xf32>
    %23 = arith.minimumf %19, %22 : vector<16x128xf32>
    %24 = vector.broadcast %1 : f32 to vector<16x128xf32>
    %25 = arith.mulf %24, %23 : vector<16x128xf32>
    %26 = arith.addf %21, %25 : vector<16x128xf32>
    %c0_16 = arith.constant 0 : index
    %c0_17 = arith.constant 0 : index
    %27 = vector.load %arg7[%c0_16, %c0_17] : memref<16x128xf32, #tpu.memory_space<vmem>>, vector<16x128xf32>
    tpu.vector_store %arg7[%c0_16, %c0_17], %26 {strides = array<i32>} : memref<16x128xf32, #tpu.memory_space<vmem>>, vector<16x128xf32>,
    return
  }
  func.func @transform_0(%arg0: i32) -> (i32, i32) {
    %c0_i32 = arith.constant 0 : i32
    %c0_i32_0 = arith.constant 0 : i32
    return %arg0, %c0_i32 : i32, i32
  }
  func.func @transform_1(%arg0: i32) -> (i32, i32) {
    %c0_i32 = arith.constant 0 : i32
    %c0_i32_0 = arith.constant 0 : i32
    %c0_i32_1 = arith.constant 0 : i32
    return %c0_i32, %c0_i32_0 : i32, i32
  }
  func.func @transform_2(%arg0: i32) -> (i32, i32) {
    %c0_i32 = arith.constant 0 : i32
    %c0_i32_0 = arith.constant 0 : i32
    %c0_i32_1 = arith.constant 0 : i32
    return %c0_i32, %c0_i32_0 : i32, i32
  }
  func.func @transform_3(%arg0: i32) -> (i32, i32) {
    %c0_i32 = arith.constant 0 : i32
    %c0_i32_0 = arith.constant 0 : i32
    %c0_i32_1 = arith.constant 0 : i32
    return %c0_i32, %c0_i32_0 : i32, i32
  }
  func.func @transform_4(%arg0: i32) -> (i32, i32) {
    %c0_i32 = arith.constant 0 : i32
    %c0_i32_0 = arith.constant 0 : i32
    %c0_i32_1 = arith.constant 0 : i32
    return %c0_i32, %c0_i32_0 : i32, i32
  }
  func.func @transform_5(%arg0: i32) -> (i32, i32) {
    %c0_i32 = arith.constant 0 : i32
    %c0_i32_0 = arith.constant 0 : i32
    %c0_i32_1 = arith.constant 0 : i32
    return %c0_i32, %c0_i32_0 : i32, i32
  }
  func.func @transform_6(%arg0: i32) -> (i32, i32) {
    %c0_i32 = arith.constant 0 : i32
    %c0_i32_0 = arith.constant 0 : i32
    return %arg0, %c0_i32 : i32, i32
  }
}

</mosaic_0001>

<bundles_post_ra>
// kernel: tpu_custom_call.1
= control target key start
LH: loop header
LB: loop body
LE: loop exit
PB: predicated region body
PF: predicated region fallthrough
CT: control target
= control target key end

     0   :  { %12 = vsyncpa [#allocation4], 0  ;;  %s697_s0 = inlined_call_operand.hbm [shape: f32[16,128], index: 0, kind: input, shape index: {}]   ;;  %s698_s1 = inlined_call_operand.hbm [shape: f32[128,128], index: 1, kind: input, shape index: {}]   ;;  %s699_s2 = inlined_call_operand.vmem [shape: f32[1,128], index: 2, kind: input, shape index: {}]   ;;  %s700_s3 = inlined_call_operand.hbm [shape: f32[128,128], index: 3, kind: input, shape index: {}]   ;;  %s701_s4 = inlined_call_operand.vmem [shape: f32[1,128], index: 4, kind: input, shape index: {}]   ;;  %s702_s5 = inlined_call_operand.<no memory space> [shape: f32[1,1], index: 5, kind: input, shape index: {}]   ;;  %s703_s6 = inlined_call_operand.hbm [shape: f32[16,128], index: 6, kind: output, shape index: {}]  }
   0x1   :  { %13 = vsyncpa [#allocation7], 0 }
   0x2   :  { %14 = vsyncpa [#allocation5], 0  ;;  %s576_s21 = smov [#allocation6]   ;;  %s577_s23 = smov [#allocation3]  }
   0x3   :  { %s32_s22 = sshll.u32 %s576_s21, 4  ;;  %s20_s24 = sshll.u32 %s577_s23, 4  ;;  %s33_s22 = int_to_ptr.vmem [resolvable:$true] %s32_s22  ;;  %s617_s24 = int_to_ptr.vmem [resolvable:$true] %s20_s24 }
   0x4   :  { %s482_s27 = scalar_lea.hbm %s698_s1, 2048 }
   0x5   :  { %p483_p0 = scmp.ne.s32.totalorder %s698_s1, %s482_s27  ;;  %p486_p1 = scmp.lt.u32.totalorder %s482_s27, %s698_s1 }
   0x7   :  { %p488_p2 = pnand %p486_p1, %p483_p0 }
   0x9   :  { %491 = shalt.err (!%p488_p2)
}
   0xa   :  { %s492_s8 = scalar_lea.vmem %s33_s22, 2048  ;;  %p497_p4 = scmp.lt.s32.totalorder %s33_s22, %s33_s22 }
   0xb   :  { %p493_p3 = scmp.ne.s32.totalorder %s33_s22, %s492_s8  ;;  %p498_p5 = scmp.lt.s32.totalorder %s492_s8, %s492_s8 }
   0xd   :  { %p499_p6 = por %p498_p5, %p497_p4 }
   0xf   :  { %p500_p7 = pnand %p499_p6, %p493_p3 }
  0x11   :  { %503 = shalt.err (!%p500_p7)
}
  0x12   :  { %s578_s9 = smov 128   ;;  %s579_s10 = smov 8  }
  0x13   :  { %38 = dma.hbm_to_vmem [thread:$0]  %s698_s1, 2048, %s33_s22, [#allocation7], %s578_s9, %s578_s9, %s579_s10  }
  0x14   :  { %s504_s15 = scalar_lea.hbm %s697_s0, 256 }
  0x15   :  { %p505_p8 = scmp.ne.s32.totalorder %s697_s0, %s504_s15  ;;  %p508_p9 = scmp.lt.u32.totalorder %s504_s15, %s697_s0 }
  0x17   :  { %p510_p10 = pnand %p508_p9, %p505_p8 }
  0x19   :  { %513 = shalt.err (!%p510_p10)
}
  0x1a   :  { %s514_s20 = scalar_lea.vmem %s617_s24, 256  ;;  %p519_p12 = scmp.lt.s32.totalorder %s617_s24, %s617_s24 }
  0x1b   :  { %p515_p11 = scmp.ne.s32.totalorder %s617_s24, %s514_s20  ;;  %p520_p13 = scmp.lt.s32.totalorder %s514_s20, %s514_s20 }
  0x1d   :  { %p521_p0 = por %p520_p13, %p519_p12 }
  0x1f   :  { %p522_p1 = pnand %p521_p0, %p515_p11 }
  0x21   :  { %525 = shalt.err (!%p522_p1)
}
  0x22   :  { %26 = dma.hbm_to_vmem [thread:$0]  %s697_s0, 256, %s617_s24, [#allocation4], %s578_s9, %s578_s9, %s579_s10  }
  0x23   :  { %s580_s22 = smov [#allocation8]   ;;  %s526_s27 = scalar_lea.hbm %s700_s3, 2048 }
  0x24   :  { %s46_s23 = sshll.u32 %s580_s22, 4  ;;  %p527_p2 = scmp.ne.s32.totalorder %s700_s3, %s526_s27  ;;  %s47_s23 = int_to_ptr.vmem [resolvable:$true] %s46_s23 }
  0x25   :  { %p530_p3 = scmp.lt.u32.totalorder %s526_s27, %s700_s3 }
  0x27   :  { %p532_p4 = pnand %p530_p3, %p527_p2 }
  0x29   :  { %535 = shalt.err (!%p532_p4)
}
  0x2a   :  { %s536_s8 = scalar_lea.vmem %s47_s23, 2048  ;;  %p541_p6 = scmp.lt.s32.totalorder %s47_s23, %s47_s23 }
  0x2b   :  { %p537_p5 = scmp.ne.s32.totalorder %s47_s23, %s536_s8  ;;  %p542_p7 = scmp.lt.s32.totalorder %s536_s8, %s536_s8 }
  0x2d   :  { %p543_p8 = por %p542_p7, %p541_p6 }
  0x2f   :  { %p544_p9 = pnand %p543_p8, %p537_p5 }
  0x31   :  { %547 = shalt.err (!%p544_p9)
}
  0x32   :  { %52 = dma.hbm_to_vmem [thread:$0]  %s700_s3, 2048, %s47_s23, [#allocation7], %s578_s9, %s578_s9, %s579_s10  }
  0x33   :  { %570 = dma.done.wait [#allocation4], 256  }
  0x34   :  { %571 = vsyncadd [#allocation4], 4294967040 }
  0x35   :  { %572 = dma.done.wait [#allocation7], 4096  }
  0x36   :  { %573 = vsyncadd [#allocation7], 4294963200  ;;  %v69_v0 = vld [vmem:[#allocation6] sm:$0xff]  ;;  %v70_v1 = vld [vmem:[#allocation6 + $0x8] sm:$0xff]  ;;  %v171_v54 = vstv %s702_s5  ;;  %s581_s5 = smov [#allocation9]  }
  0x37   :  { %v71_v2 = vld [vmem:[#allocation6 + $0x10] sm:$0xff]  ;;  %v412_v3 = vpack.c.bf16 %v70_v1, %v69_v0  ;;  %v72_v4 = vld [vmem:[#allocation6 + $0x18] sm:$0xff]  ;;  %v73_v6 = vld [vmem:[#allocation6 + $0x20] sm:$0xff]  ;;  %s291_s15 = sshll.u32 %s581_s5, 4  ;;  %s292_s15 = int_to_ptr.vmem [resolvable:$true] %s291_s15 }
  0x38   :  { %v416_v5 = vpack.c.bf16 %v72_v4, %v71_v2  ;;  %v74_v7 = vld [vmem:[#allocation6 + $0x28] sm:$0xff]  ;;  %v75_v9 = vld [vmem:[#allocation6 + $0x30] sm:$0xff]  ;;  %v76_v10 = vld [vmem:[#allocation6 + $0x38] sm:$0xff]  ;;  %p553_p11 = scmp.lt.s32.totalorder %s292_s15, %s292_s15 }
  0x39   :  { %413 = vmatprep.subr.bf16.mxu0 %v412_v3  ;;  %v420_v8 = vpack.c.bf16 %v74_v7, %v73_v6  ;;  %v669_v11 = vld [vmem:[#allocation3] sm:$0xff]  ;;  %v176_v12 = vld [vmem:[#allocation8] sm:$0xff]  ;;  %v177_v13 = vld [vmem:[#allocation8 + $0x8] sm:$0xff]  ;;  %v424_v20 = vpack.c.bf16 %v76_v10, %v75_v9 }
  0x3a   :  { %415 = vmatpush3.bf16.msra.mxu0 %v412_v3  ;;  %374 = vmatprep.mubr.f32.mxu0 %v669_v11  ;;  %v178_v14 = vld [vmem:[#allocation8 + $0x10] sm:$0xff]  ;;  %v444_v15 = vpack.c.bf16 %v177_v13, %v176_v12  ;;  %v179_v16 = vld [vmem:[#allocation8 + $0x18] sm:$0xff]  ;;  %v180_v18 = vld [vmem:[#allocation8 + $0x20] sm:$0xff] }
  0x3b   :  { %417 = vmatprep.subr.bf16.mxu0 %v416_v5  ;;  %v448_v17 = vpack.c.bf16 %v179_v16, %v178_v14  ;;  %v181_v19 = vld [vmem:[#allocation8 + $0x28] sm:$0xff]  ;;  %v77_v21 = vld [vmem:[#allocation6 + $0x40] sm:$0xff]  ;;  %v182_v24 = vld [vmem:[#allocation8 + $0x30] sm:$0xff] }
  0x3c   :  { %445 = vmatprep.subr.bf16.mxu1 %v444_v15  ;;  %v78_v22 = vld [vmem:[#allocation6 + $0x48] sm:$0xff]  ;;  %v452_v23 = vpack.c.bf16 %v181_v19, %v180_v18  ;;  %v183_v25 = vld [vmem:[#allocation8 + $0x38] sm:$0xff]  ;;  %v79_v27 = vld [vmem:[#allocation6 + $0x50] sm:$0xff] }
  0x3d   :  { %447 = vmatpush3.bf16.msra.mxu1 %v444_v15  ;;  %v428_v26 = vpack.c.bf16 %v78_v22, %v77_v21  ;;  %v80_v28 = vld [vmem:[#allocation6 + $0x58] sm:$0xff]  ;;  %v456_v29 = vpack.c.bf16 %v183_v25, %v182_v24  ;;  %v184_v30 = vld [vmem:[#allocation8 + $0x40] sm:$0xff]  ;;  %v185_v31 = vld [vmem:[#allocation8 + $0x48] sm:$0xff] }
  0x3e   :  { %419 = vmatpush3.bf16.msra.mxu0 %v416_v5  ;;  %449 = vmatprep.subr.bf16.mxu1 %v448_v17  ;;  %v432_v32 = vpack.c.bf16 %v80_v28, %v79_v27  ;;  %v81_v33 = vld [vmem:[#allocation6 + $0x60] sm:$0xff]  ;;  %v82_v34 = vld [vmem:[#allocation6 + $0x68] sm:$0xff]  ;;  %v460_v35 = vpack.c.bf16 %v185_v31, %v184_v30  ;;  %v186_v36 = vld [vmem:[#allocation8 + $0x50] sm:$0xff] }
  0x3f   :  { %421 = vmatprep.subr.bf16.mxu0 %v420_v8  ;;  %v187_v37 = vld [vmem:[#allocation8 + $0x58] sm:$0xff]  ;;  %v436_v38 = vpack.c.bf16 %v82_v34, %v81_v33  ;;  %v83_v39 = vld [vmem:[#allocation6 + $0x70] sm:$0xff]  ;;  %v188_v44 = vld [vmem:[#allocation8 + $0x60] sm:$0xff] }
  0x40   :  { %v84_v40 = vld [vmem:[#allocation6 + $0x78] sm:$0xff]  ;;  %v464_v41 = vpack.c.bf16 %v187_v37, %v186_v36  ;;  %v189_v45 = vld [vmem:[#allocation8 + $0x68] sm:$0xff]  ;;  %v190_v47 = vld [vmem:[#allocation8 + $0x70] sm:$0xff] }
  0x41   :  { %451 = vmatpush3.bf16.msra.mxu1 %v448_v17  ;;  %v440_v42 = vpack.c.bf16 %v84_v40, %v83_v39  ;;  %v67_v43 = vld [vmem:[#allocation3 + $0x8] sm:$0xff]  ;;  %v468_v46 = vpack.c.bf16 %v189_v45, %v188_v44  ;;  %v304_v50 = vld [vmem:[%s699_s2] ss:$0 sm:$0xff] }
  0x42   :  { %423 = vmatpush3.bf16.msra.mxu0 %v420_v8  ;;  %453 = vmatprep.subr.bf16.mxu1 %v452_v23  ;;  %v191_v48 = vld [vmem:[#allocation8 + $0x78] sm:$0xff]  ;;  %v305_v0 = vld [vmem:[%s701_s4] ss:$0 sm:$0xff]  ;;  %s548_s4 = scalar_lea.vmem %s292_s15, 256 }
  0x43   :  { %425 = vmatprep.subr.bf16.mxu0 %v424_v20  ;;  %v472_v49 = vpack.c.bf16 %v191_v48, %v190_v47  ;;  %p549_p10 = scmp.ne.s32.totalorder %s292_s15, %s548_s4  ;;  %p554_p12 = scmp.lt.s32.totalorder %s548_s4, %s548_s4 }
  0x45   :  { %455 = vmatpush3.bf16.msra.mxu1 %v452_v23  ;;  %p555_p13 = por %p554_p12, %p553_p11 }
  0x46   :  { %427 = vmatpush3.bf16.msra.mxu0 %v424_v20  ;;  %457 = vmatprep.subr.bf16.mxu1 %v456_v29 }
  0x47   :  { %429 = vmatprep.subr.bf16.mxu0 %v428_v26  ;;  %p556_p0 = pnand %p555_p13, %p549_p10 }
  0x49   :  { %459 = vmatpush3.bf16.msra.mxu1 %v456_v29 }
  0x4a   :  { %431 = vmatpush3.bf16.msra.mxu0 %v428_v26  ;;  %461 = vmatprep.subr.bf16.mxu1 %v460_v35 }
  0x4b   :  { %433 = vmatprep.subr.bf16.mxu0 %v432_v32 }
  0x4d   :  { %463 = vmatpush3.bf16.msra.mxu1 %v460_v35 }
  0x4e   :  { %435 = vmatpush3.bf16.msra.mxu0 %v432_v32  ;;  %465 = vmatprep.subr.bf16.mxu1 %v464_v41 }
  0x4f   :  { %437 = vmatprep.subr.bf16.mxu0 %v436_v38 }
  0x51   :  { %467 = vmatpush3.bf16.msra.mxu1 %v464_v41 }
  0x52   :  { %439 = vmatpush3.bf16.msra.mxu0 %v436_v38  ;;  %469 = vmatprep.subr.bf16.mxu1 %v468_v46 }
  0x53   :  { %441 = vmatprep.subr.bf16.mxu0 %v440_v42 }
  0x55   :  { %471 = vmatpush3.bf16.msra.mxu1 %v468_v46 }
  0x56   :  { %443 = vmatpush3.bf16.msra.mxu0 %v440_v42  ;;  %473 = vmatprep.subr.bf16.mxu1 %v472_v49 }
  0x59   :  { %375 = vmatmul.mubr.f32.vlgmr.msra.gmra.mrb[0].mxu0 %v67_v43  ;;  %475 = vmatpush3.bf16.msra.mxu1 %v472_v49 }
 0x12c   :  { %v376_v51 = vpop.f32.mrb[0].mxu0 }
 0x12d   :  { %v164_v52 = vadd.f32 %v376_v51, %v304_v50  ;;  %v158_v53 = vpop.f32.mrb[1].mxu0 }
 0x12e   :  { %v159_v55 = vadd.f32 %v304_v50, %v158_v53 }
 0x12f   :  { %v170_v56 = vmin.f32 %v164_v52, 0.0  ;;  %v168_v61 = vmax.f32 %v164_v52, 0.0 }
 0x130   :  { %v169_v57 = vmin.f32 %v159_v55, 0.0  ;;  %v167_v59 = vmax.f32 %v159_v55, 0.0 }
 0x131   :  { %v173_v58 = vmul.f32 %v171_v54, %v170_v56 }
 0x132   :  { %v172_v60 = vmul.f32 %v171_v54, %v169_v57 }
 0x133   :  { %v175_v63 = vadd.f32 %v173_v58, %v168_v61 }
 0x134   :  { %v174_v62 = vadd.f32 %v172_v60, %v167_v59 }
 0x136   :  { %409 = vmatprep.mubr.f32.mxu1 %v174_v62 }
 0x137   :  { %410 = vmatmul.mubr.f32.vlgmr.msra.gmra.mrb[0].mxu1 %v175_v63 }
 0x20a   :  { %v411_v1 = vpop.f32.mrb[0].mxu1 }
 0x20b   :  { %v271_v2 = vadd.f32 %v411_v1, %v305_v0  ;;  %v265_v3 = vpop.f32.mrb[1].mxu1 }
 0x20c   :  { %v266_v4 = vadd.f32 %v305_v0, %v265_v3 }
 0x20d   :  { %v275_v5 = vadd.f32 %v271_v2, %v67_v43 }
 0x20e   :  { %v274_v6 = vadd.f32 %v266_v4, %v669_v11 }
 0x20f   :  { %v279_v7 = vmin.f32 %v275_v5, 0.0  ;;  %v277_v9 = vmax.f32 %v275_v5, 0.0 }
 0x210   :  { %v278_v8 = vmin.f32 %v274_v6, 0.0  ;;  %v276_v12 = vmax.f32 %v274_v6, 0.0 }
 0x211   :  { %v281_v10 = vmul.f32 %v279_v7, %v171_v54 }
 0x212   :  { %v280_v13 = vmul.f32 %v278_v8, %v171_v54 }
 0x213   :  { %v283_v14 = vadd.f32 %v281_v10, %v277_v9 }
 0x214   :  { %v282_v15 = vadd.f32 %v280_v13, %v276_v12 }
 0x215   :  { %285 = vst [vmem:[#allocation9 + $0x8] sm:$0xff] %v283_v14 }
 0x216   :  { %284 = vst [vmem:[#allocation9] sm:$0xff] %v282_v15 }
 0x217   :  { %559 = shalt.err (!%p556_p0)
}
 0x218   :  { %s560_s18 = scalar_lea.hbm %s703_s6, 256 }
 0x219   :  { %p561_p1 = scmp.ne.s32.totalorder %s703_s6, %s560_s18  ;;  %p564_p2 = scmp.lt.u32.totalorder %s560_s18, %s703_s6 }
 0x21b   :  { %p566_p3 = pnand %p564_p2, %p561_p1 }
 0x21d   :  { %569 = shalt.err (!%p566_p3)
}
 0x21e   :  { %297 = dma.vmem_to_hbm [thread:$0]  %s292_s15, 256, %s703_s6, [#allocation5], %s578_s9, %s578_s9, %s579_s10  }
 0x21f   :  { %574 = dma.done.wait [#allocation5], 256  }
 0x220   :  { %575 = vsyncadd [#allocation5], 4294967040 }
 0x221   :  { %301 = vsyncpa [#allocation4], 1 }
 0x222   :  { %302 = vsyncpa [#allocation7], 1 }
 0x223   :  { %303 = vsyncpa [#allocation5], 1 }

</bundles_post_ra>
